<compile_context>
chip_gen: v7x
topology: tpu7x:2x2x1
jax: 0.10.0
libtpu: 0.0.40
codegen_flags: <defaults>
</compile_context>

<pallas_src>
import math

import numpy as np

import jax
import jax.numpy as jnp
from jax.experimental import pallas as pl
from jax.experimental.pallas import tpu as pltpu

INPUT_DIMS = 3
MULTIRES = 10
MAX_FREQ = MULTIRES - 1          # max_deg = 9
NUM_FREQS = MAX_FREQ             # scales 2^0 .. 2^8
FD = NUM_FREQS * INPUT_DIMS      # 27
OUT_DIMS = 2 * FD                # 54 == input_dims * 2 * (multires - 1)

# Frequency-major per-feature scale column [2^0,2^0,2^0, 2^1,2^1,2^1, ...].
# Passed to the kernel as inputs (Pallas rejects captured array constants).
_SCALE_COL = np.repeat(
    np.exp2(np.arange(NUM_FREQS, dtype=np.float64)), INPUT_DIMS
).astype(np.float32)[:, None]                                  # (27, 1)
_NEG_HALF_SCALE_SQ_COL = (
    -0.5 * _SCALE_COL.astype(np.float64) ** 2
).astype(np.float32)                                           # (27, 1), exact


def _ipe_kernel(scale_ref, nhss_ref, x_ref, cov_ref, out_ref):
    # Feature-major tiles: x/cov are (3, TM), out is (54, TM); rows on lanes.
    x = x_ref[...].astype(jnp.float32)        # (3, TM)
    cov = cov_ref[...].astype(jnp.float32)    # (3, TM)
    scale = scale_ref[...]                    # (27, 1)  2^f, exact
    neg_half_scale_sq = nhss_ref[...]         # (27, 1)  -0.5 * 4^f, exact

    # Sublane replication (cheap, XLU) so all heavy math runs on dense
    # (27, TM) slabs: rows ordered [f0d0, f0d1, f0d2, f1d0, ...].
    x_rep = jnp.tile(x, (NUM_FREQS, 1))       # (27, TM)
    c_rep = jnp.tile(cov, (NUM_FREQS, 1))     # (27, TM)

    y = x_rep * scale                         # exact power-of-two scaling
    atten = jnp.exp(c_rep * neg_half_scale_sq)  # exp(-0.5 * var * scale^2)

    # expected_sin on y and on y + pi/2 (== cos(y)); two full-lane stores.
    out_ref[:FD, :] = (atten * jnp.sin(y)).astype(out_ref.dtype)
    out_ref[FD:, :] = (atten * jnp.cos(y)).astype(out_ref.dtype)


def _round_up(v, m):
    return (v + m - 1) // m * m


def integrated_positional_encoding(x, x_cov_diag, *, tm=2048,
                                   out_dtype=jnp.float32,
                                   feature_major=False):
    """mip-NeRF integrated positional encoding.

    x, x_cov_diag: float arrays of shape [..., 3] (coords in [-pi, pi] and
    diagonal covariances).  Returns [..., 54] (module semantics) or, with
    feature_major=True, a (54, ...) array that skips the final transpose
    (lane-dense all the way for consumers that can take that layout).

    tm: row tile (rows live on lanes); sweep 1024-4096.  On v7x prefer a tm
    that gives >= 2 grid steps so both TensorCores get work.
    out_dtype=jnp.bfloat16 nearly halves output HBM traffic on v5e/v6e (opt-in:
    it degrades precision vs. the f32 reference).
    """
    lead = x.shape[:-1]
    d = x.shape[-1]
    assert d == INPUT_DIMS

    # Feature-major inputs: (3, N).  This transpose is tiny (24 B/row) layout
    # plumbing; the heavy output stays lane-dense inside the kernel.
    xt = x.reshape(-1, d).T
    ct = x_cov_diag.reshape(-1, d).T
    n = xt.shape[1]

    # Tile selection: single full block for small n (block == array dims, so
    # no (8,128) constraint), else a 128-aligned lane tile with a ragged last
    # block handled by Pallas (no pad / slice round-trips through HBM).
    if n <= tm:
        tm_eff = max(n, 1)
    else:
        tm_eff = _round_up(min(tm, n), 128)
    grid = (pl.cdiv(n, tm_eff),)

    scale_col = jnp.asarray(_SCALE_COL)
    nhss_col = jnp.asarray(_NEG_HALF_SCALE_SQ_COL)

    out = pl.pallas_call(
        _ipe_kernel,
        out_shape=jax.ShapeDtypeStruct((OUT_DIMS, n), out_dtype),
        grid=grid,
        in_specs=[
            pl.BlockSpec((FD, 1), lambda i: (0, 0)),            # scale (resident)
            pl.BlockSpec((FD, 1), lambda i: (0, 0)),            # -0.5*scale^2
            pl.BlockSpec((INPUT_DIMS, tm_eff), lambda i: (0, i)),
            pl.BlockSpec((INPUT_DIMS, tm_eff), lambda i: (0, i)),
        ],
        out_specs=pl.BlockSpec((OUT_DIMS, tm_eff), lambda i: (0, i)),
        compiler_params=pltpu.CompilerParams(
            dimension_semantics=("parallel",),
            # Double-buffered blocks ~576 B per lane-column plus a few
            # (27..54, tm) f32 temporaries: ~3 MiB at tm=2048.  32 MiB is
            # comfortable on v5e/v6e/v7x.
            vmem_limit_bytes=32 * 1024 * 1024,
        ),
    )(scale_col, nhss_col, xt, ct)

    if feature_major:
        return out.reshape(OUT_DIMS, *lead)
    # Module contract: feature-last [..., 54].
    return out.T.reshape(*lead, OUT_DIMS)


def _reference(x, x_cov_diag):
    """Pure-JAX port of the PyTorch module, for verification."""
    scales = jnp.asarray([2.0 ** i for i in range(0, MAX_FREQ)], jnp.float32)
    shape = list(x.shape[:-1]) + [-1]
    y = jnp.reshape(x[..., None, :] * scales[:, None], shape)
    y_var = jnp.reshape(x_cov_diag[..., None, :] * scales[:, None] ** 2, shape)
    yy = jnp.concatenate([y, y + 0.5 * math.pi], axis=-1)
    vv = jnp.concatenate([y_var, y_var], axis=-1)
    return jnp.exp(-0.5 * vv) * jnp.sin(yy)


if __name__ == "__main__":
    key = jax.random.PRNGKey(0)
    k1, k2, k3, k4 = jax.random.split(key, 4)

    # Small shapes implied by the module: [..., 3] coordinates + diagonal cov.
    batch, pts = 2, 50                      # n = 100 flattened rows
    x = jax.random.uniform(k1, (batch, pts, INPUT_DIMS),
                           minval=-math.pi, maxval=math.pi, dtype=jnp.float32)
    x_cov_diag = jax.random.uniform(k2, (batch, pts, INPUT_DIMS),
                                    minval=0.0, maxval=0.1, dtype=jnp.float32)

    out = integrated_positional_encoding(x, x_cov_diag)
    out = jax.block_until_ready(out)
    ref = _reference(x, x_cov_diag)
    assert out.shape == (batch, pts, OUT_DIMS)
    # cos(y) vs the reference's sin(y + pi/2): identical math; f32 rounding of
    # the (y + pi/2) argument at the top frequency (|y| up to 2^8*pi) plus
    # cross-implementation sin range reduction gives a few 1e-5 drift.
    err = float(jnp.max(jnp.abs(out - ref)))
    assert jnp.allclose(out, ref, atol=2e-4, rtol=2e-4), err

    # Multi-block + ragged-last-block path (n=600, tm=256 -> 3 blocks).
    x2 = jax.random.uniform(k3, (2, 300, INPUT_DIMS),
                            minval=-math.pi, maxval=math.pi, dtype=jnp.float32)
    c2 = jax.random.uniform(k4, (2, 300, INPUT_DIMS),
                            minval=0.0, maxval=0.1, dtype=jnp.float32)
    out2 = integrated_positional_encoding(x2, c2, tm=256)
    out2 = jax.block_until_ready(out2)
    ref2 = _reference(x2, c2)
    assert out2.shape == (2, 300, OUT_DIMS)
    err2 = float(jnp.max(jnp.abs(out2 - ref2)))
    assert jnp.allclose(out2, ref2, atol=2e-4, rtol=2e-4), err2

    # Lane-dense feature-major output path (no wrapper transpose).
    out_fm = integrated_positional_encoding(x, x_cov_diag, feature_major=True)
    out_fm = jax.block_until_ready(out_fm)
    assert out_fm.shape == (OUT_DIMS, batch, pts)
    assert jnp.allclose(jnp.moveaxis(out_fm, 0, -1), ref, atol=2e-4, rtol=2e-4)

    print("KERNEL_OK")
</pallas_src>

<mosaic_0001>
module attributes {stable_mosaic.version = 11 : i64} {
  func.func @_ipe_kernel(%arg0: i32, %arg1: memref<27x1xf32, #tpu.memory_space<vmem>>, %arg2: memref<27x1xf32, #tpu.memory_space<vmem>>, %arg3: memref<3x100xf32, #tpu.memory_space<vmem>>, %arg4: memref<3x100xf32, #tpu.memory_space<vmem>>, %arg5: memref<54x100xf32, #tpu.memory_space<vmem>>) attributes {dimension_semantics = [#tpu.dimension_semantics<parallel>], iteration_bounds = array<i64: 1>, scalar_prefetch = 0 : i64, scratch_operands = 0 : i64, tpu.core_type = #tpu.core_type<tc>, window_params = [{pipeline_mode = #tpu.pipeline_mode<synchronous>, transform_indices = @transform_0, window_bounds = array<i64: 27, 1>}, {pipeline_mode = #tpu.pipeline_mode<synchronous>, transform_indices = @transform_1, window_bounds = array<i64: 27, 1>}, {transform_indices = @transform_2, window_bounds = array<i64: 3, 100>}, {transform_indices = @transform_3, window_bounds = array<i64: 3, 100>}, {transform_indices = @transform_4, window_bounds = array<i64: 54, 100>}]} {
    %c0 = arith.constant 0 : index
    %c0_0 = arith.constant 0 : index
    %0 = vector.load %arg3[%c0, %c0_0] : memref<3x100xf32, #tpu.memory_space<vmem>>, vector<3x100xf32>
    %c0_1 = arith.constant 0 : index
    %c0_2 = arith.constant 0 : index
    %1 = vector.load %arg4[%c0_1, %c0_2] : memref<3x100xf32, #tpu.memory_space<vmem>>, vector<3x100xf32>
    %c0_3 = arith.constant 0 : index
    %c0_4 = arith.constant 0 : index
    %2 = vector.load %arg1[%c0_3, %c0_4] : memref<27x1xf32, #tpu.memory_space<vmem>>, vector<27x1xf32>
    %c0_5 = arith.constant 0 : index
    %c0_6 = arith.constant 0 : index
    %3 = vector.load %arg2[%c0_5, %c0_6] : memref<27x1xf32, #tpu.memory_space<vmem>>, vector<27x1xf32>
    %4 = tpu.concatenate %0, %0, %0, %0, %0, %0, %0, %0, %0 in 0 : vector<3x100xf32>, vector<3x100xf32>, vector<3x100xf32>, vector<3x100xf32>, vector<3x100xf32>, vector<3x100xf32>, vector<3x100xf32>, vector<3x100xf32>, vector<3x100xf32> -> vector<27x100xf32>
    %5 = tpu.concatenate %1, %1, %1, %1, %1, %1, %1, %1, %1 in 0 : vector<3x100xf32>, vector<3x100xf32>, vector<3x100xf32>, vector<3x100xf32>, vector<3x100xf32>, vector<3x100xf32>, vector<3x100xf32>, vector<3x100xf32>, vector<3x100xf32> -> vector<27x100xf32>
    %6 = vector.broadcast %2 : vector<27x1xf32> to vector<27x100xf32>
    %7 = arith.mulf %4, %6 : vector<27x100xf32>
    %8 = vector.broadcast %3 : vector<27x1xf32> to vector<27x100xf32>
    %9 = arith.mulf %5, %8 : vector<27x100xf32>
    %10 = math.exp %9 : vector<27x100xf32>
    %11 = math.sin %7 : vector<27x100xf32>
    %12 = arith.mulf %10, %11 : vector<27x100xf32>
    %c0_7 = arith.constant 0 : index
    %c0_8 = arith.constant 0 : index
    %13 = vector.load %arg5[%c0_7, %c0_8] : memref<54x100xf32, #tpu.memory_space<vmem>>, vector<27x100xf32>
    tpu.vector_store %arg5[%c0_7, %c0_8], %12 {strides = array<i32>} : memref<54x100xf32, #tpu.memory_space<vmem>>, vector<27x100xf32>,
    %14 = math.cos %7 : vector<27x100xf32>
    %15 = arith.mulf %10, %14 : vector<27x100xf32>
    %c27 = arith.constant 27 : index
    %c0_9 = arith.constant 0 : index
    %16 = vector.load %arg5[%c27, %c0_9] : memref<54x100xf32, #tpu.memory_space<vmem>>, vector<27x100xf32>
    tpu.vector_store %arg5[%c27, %c0_9], %15 {strides = array<i32>} : memref<54x100xf32, #tpu.memory_space<vmem>>, vector<27x100xf32>,
    return
  }
  func.func @transform_0(%arg0: i32) -> (i32, i32) {
    %c0_i32 = arith.constant 0 : i32
    %c0_i32_0 = arith.constant 0 : i32
    %c0_i32_1 = arith.constant 0 : i32
    return %c0_i32, %c0_i32_0 : i32, i32
  }
  func.func @transform_1(%arg0: i32) -> (i32, i32) {
    %c0_i32 = arith.constant 0 : i32
    %c0_i32_0 = arith.constant 0 : i32
    %c0_i32_1 = arith.constant 0 : i32
    return %c0_i32, %c0_i32_0 : i32, i32
  }
  func.func @transform_2(%arg0: i32) -> (i32, i32) {
    %c0_i32 = arith.constant 0 : i32
    %c0_i32_0 = arith.constant 0 : i32
    return %c0_i32, %arg0 : i32, i32
  }
  func.func @transform_3(%arg0: i32) -> (i32, i32) {
    %c0_i32 = arith.constant 0 : i32
    %c0_i32_0 = arith.constant 0 : i32
    return %c0_i32, %arg0 : i32, i32
  }
  func.func @transform_4(%arg0: i32) -> (i32, i32) {
    %c0_i32 = arith.constant 0 : i32
    %c0_i32_0 = arith.constant 0 : i32
    return %c0_i32, %arg0 : i32, i32
  }
}

</mosaic_0001>

<bundles_post_ra>
// kernel: tpu_custom_call.1
= control target key start
LH: loop header
LB: loop body
LE: loop exit
PB: predicated region body
PF: predicated region fallthrough
CT: control target
= control target key end

     0   :  { %v1105_v2 = vmov 0   ;;  %s1533_s0 = inlined_call_operand.vmem [shape: f32[27,1], index: 0, kind: input, shape index: {}]   ;;  %s1534_s1 = inlined_call_operand.vmem [shape: f32[27,1], index: 1, kind: input, shape index: {}]   ;;  %s1535_s2 = inlined_call_operand.vmem [shape: f32[3,100], index: 2, kind: input, shape index: {}]   ;;  %s1536_s3 = inlined_call_operand.vmem [shape: f32[3,100], index: 3, kind: input, shape index: {}]   ;;  %s1537_s4 = inlined_call_operand.hbm [shape: f32[54,100], index: 4, kind: output, shape index: {}]  }
   0x1   :  { %v22_v0 = vld [vmem:[%s1533_s0 + $0x10] sm:$0xff]  ;;  %v20_v1 = vld [vmem:[%s1533_s0] sm:$0xff]  ;;  %1056 = vset.pattern.permute.xlu1 %v1105_v2  ;;  %1055 = vset.pattern.permute.xlu0 %v1105_v2  ;;  %v23_v3 = vld [vmem:[%s1533_s0 + $0x18] sm:$0x7] }
   0x2   :  { %91 = vperm.xlu1 %1056, %v22_v0   ;;  %81 = vperm.xlu0 %1055, %v20_v1   ;;  %v21_v4 = vld [vmem:[%s1533_s0 + $0x8] sm:$0xff] }
   0x3   :  { %9 = vsyncpa [#allocation3], 0  ;;  %v25_v5 = vld [vmem:[%s1534_s1 + $0x8] sm:$0xff]  ;;  %v24_v6 = vld [vmem:[%s1534_s1] sm:$0xff]  ;;  %vm47_vm0 = vcmask 1040384   ;;  %vm43_vm1 = vcmask 1042432  }
   0x4   :  { %v27_v7 = vld [vmem:[%s1534_s1 + $0x18] sm:$0x7]  ;;  %v26_v8 = vld [vmem:[%s1534_s1 + $0x10] sm:$0xff]  ;;  %v1167_v9 = vld [vmem:[%s1536_s3] sm:$0x7]  ;;  %vm49_vm2 = vcmask 1043456  }
   0x5   :  { %v60_v10 = vrot.slane %v1167_v9, 2  ;;  %v62_v11 = vrot.slane %v1167_v9, 7  ;;  %v64_v12 = vrot.slane %v1167_v9, 4  ;;  %v58_v13 = vrot.slane %v1167_v9, 5  ;;  %v18_v20 = vld [vmem:[%s1535_s2] sm:$0x7] }
   0x6   :  { %96 = vperm.xlu1 %1056, %v23_v3   ;;  %86 = vperm.xlu0 %1055, %v21_v4   ;;  %v66_v14 = vrot.slane %v1167_v9, 1  ;;  %vm45_vm3 = vcmask 1045504   ;;  %vm51_vm4 = vcmask 1046528   ;;  %v37_v21 = vrot.slane %v18_v20, 1  ;;  %s1112_s2 = smov [#allocation2]  }
   0x7   :  { %v74_v15 = vsel %vm47_vm0, %v60_v10, %v62_v11  ;;  %v72_v17 = vsel %vm43_vm1, %v1167_v9, %v58_v13  ;;  %v39_v22 = vrot.slane %v18_v20, 6  ;;  %v29_v23 = vrot.slane %v18_v20, 5  ;;  %s986_s6 = sshll.u32 %s1112_s2, 4  ;;  %s987_s6 = int_to_ptr.vmem [resolvable:$true] %s986_s6 }
   0x8   :  { %v75_v16 = vsel %vm49_vm2, %v74_v15, %v64_v12  ;;  %v1184_v19 = vsel %vm45_vm3, %v72_v17, %v60_v10  ;;  %vm53_vm5 = vcmask 1041408   ;;  %v41_v24 = vrot.slane %v18_v20, 3  ;;  %s1081_s7 = scalar_lea.vmem %s987_s6, 896  ;;  %p1086_p1 = scmp.lt.s32.totalorder %s987_s6, %s987_s6 }
   0x9   :  { %v1181_v18 = vsel %vm51_vm4, %v75_v16, %v66_v14  ;;  %v31_v25 = vrot.slane %v18_v20, 2  ;;  %vm55_vm6 = vcmask 1044480   ;;  %v54_v26 = vsel %vm53_vm5, %v37_v21, %v39_v22  ;;  %p1082_p0 = scmp.ne.s32.totalorder %s987_s6, %s1081_s7  ;;  %p1087_p2 = scmp.lt.s32.totalorder %s1081_s7, %s1081_s7 }
   0xa   :  { %110 = vperm.xlu1 %1056, %v25_v5   ;;  %105 = vperm.xlu0 %1055, %v24_v6   ;;  %v44_v27 = vsel %vm43_vm1, %v18_v20, %v29_v23  ;;  %v56_v28 = vsel %vm55_vm6, %v54_v26, %v41_v24  ;;  %v33_v30 = vrot.slane %v18_v20, 7  ;;  %v35_v35 = vrot.slane %v18_v20, 4 }
   0xb   :  { %v46_v29 = vsel %vm45_vm3, %v44_v27, %v31_v25  ;;  %v1106_v5 = vmov 683565275   ;;  %v1107_v10 = vmov 2475754826   ;;  %v1108_v12 = vmov 2131351028   ;;  %p1088_p3 = por %p1087_p2, %p1086_p1 }
   0xc   :  { %v48_v38 = vsel %vm47_vm0, %v31_v25, %v33_v30  ;;  %v1109_v15 = vmov 2102212464   ;;  %v1110_v17 = vmov 920167782   ;;  %v1111_v26 = vmov 1326507024  }
   0xd   :  { %v50_v47 = vsel %vm49_vm2, %v48_v38, %v35_v35  ;;  %p1089_p4 = pnand %p1088_p3, %p1082_p0 }
   0xe   :  { %120 = vperm.xlu1 %1056, %v27_v7   ;;  %115 = vperm.xlu0 %1055, %v26_v8   ;;  %v52_v52 = vsel %vm51_vm4, %v50_v47, %v37_v21 }
  0x81   :  { %v92_v31 = vpop.permute.xlu1 %91  ;;  %v82_v32 = vpop.permute.xlu0 %81 }
  0x82   :  { %v1193_v33 = vmul.f32 %v92_v31, %v56_v28  ;;  %v1195_v34 = vmul.f32 %v82_v32, %v46_v29 }
  0x84   :  { %v343_v36 = vand.u32 2147483647, %v1193_v33  ;;  %v346_v37 = vand.u32 2139095040, %v1193_v33  ;;  %v135_v39 = vand.u32 2147483647, %v1195_v34  ;;  %v138_v40 = vand.u32 2139095040, %v1195_v34 }
  0x85   :  { %v97_v41 = vpop.permute.xlu1 %96  ;;  %v87_v57 = vpop.permute.xlu0 %86 }
  0x86   :  { %v347_v42 = vshrl.u32 %v346_v37, 23  ;;  %v1202_v43 = vmul.f32 %v97_v41, %v18_v20  ;;  %v350_v44 = vand.u32 8388607, %v343_v36  ;;  %v139_v45 = vshrl.u32 %v138_v40, 23 }
  0x87   :  { %v142_v46 = vand.u32 8388607, %v135_v39  ;;  %v1211_v63 = vmul.f32 %v87_v57, %v52_v52 }
  0x88   :  { %v1005_v48 = vadd.s32 4294967169, %v347_v42  ;;  %v997_v49 = vadd.s32 4294967169, %v139_v45  ;;  %v450_v50 = vand.u32 2139095040, %v1202_v43  ;;  %v351_v53 = vor.u32 8388608, %v350_v44 }
  0x89   :  { %v143_v54 = vor.u32 8388608, %v142_v46  ;;  %v447_v3 = vand.u32 2147483647, %v1202_v43 }
  0x8a   :  { %v353_v51 = vadd.s32 1, %v1005_v48  ;;  %v145_v55 = vadd.s32 1, %v997_v49  ;;  %v451_v56 = vshrl.u32 %v450_v50, 23  ;;  %v1213_v0 = vshll.u32 %v351_v53, 8 }
  0x8b   :  { %v1217_v2 = vshll.u32 %v143_v54, 8 }
  0x8c   :  { %vm354_vm7 = vcmp.gt.s32.totalorder %v353_v51, 0  ;;  %vm146_vm8 = vcmp.gt.s32.totalorder %v145_v55, 0  ;;  %v1009_v59 = vadd.s32 4294967169, %v451_v56 }
  0x8d   :  { %v355_v58 = vsel %vm354_vm7, %v353_v51, 0  ;;  %v147_v62 = vsel %vm146_vm8, %v145_v55, 0 }
  0x8e   :  { %v356_v60 = vshrl.u32 %v355_v58, 5  ;;  %v357_v61 = vand.u32 31, %v355_v58  ;;  %v1215_v1 = vshrl.u32 %v147_v62, 5  ;;  %v149_v7 = vand.u32 31, %v147_v62 }
  0x8f   :  { %v1221_v8 = vadd.s32 1, %v1009_v59 }
  0x90   :  { %v358_v4 = vsub.s32 32, %v357_v61  ;;  %v360_v6 = vshll.u32 %v1106_v5, %v357_v61  ;;  %v363_v11 = vshll.u32 %v1107_v10, %v357_v61  ;;  %v366_v13 = vshll.u32 %v1108_v12, %v357_v61 }
  0x91   :  { %v369_v16 = vshll.u32 %v1109_v15, %v357_v61  ;;  %v372_v20 = vshll.u32 %v1110_v17, %v357_v61  ;;  %vm375_vm9 = vcmp.lt.s32.totalorder %v356_v60, 1  ;;  %vm376_vm10 = vcmp.lt.s32.totalorder %v356_v60, 2 }
  0x92   :  { %v361_v21 = vshrl.u32 %v1107_v10, %v358_v4  ;;  %v364_v22 = vshrl.u32 %v1108_v12, %v358_v4  ;;  %v367_v23 = vshrl.u32 %v1109_v15, %v358_v4  ;;  %v359_v24 = vshrl.u32 %v1106_v5, %v358_v4 }
  0x93   :  { %v370_v25 = vshrl.u32 %v1110_v17, %v358_v4  ;;  %v373_v27 = vshrl.u32 %v1111_v26, %v358_v4  ;;  %v150_v31 = vsub.s32 32, %v149_v7  ;;  %vm377_vm11 = vcmp.lt.s32.totalorder %v356_v60, 3 }
  0x94   :  { %v362_v28 = vor.u32 %v361_v21, %v360_v6  ;;  %v365_v29 = vor.u32 %v364_v22, %v363_v11  ;;  %v368_v30 = vor.u32 %v367_v23, %v366_v13  ;;  %vm378_vm12 = vcmp.lt.s32.totalorder %v356_v60, 4 }
  0x95   :  { %v371_v32 = vor.u32 %v370_v25, %v369_v16  ;;  %v374_v35 = vor.u32 %v373_v27, %v372_v20  ;;  %v152_v46 = vshll.u32 %v1106_v5, %v149_v7  ;;  %v153_v49 = vshrl.u32 %v1107_v10, %v150_v31 }
  0x96   :  { %v379_v37 = vsel %vm375_vm9, %v359_v24, %v362_v28  ;;  %v380_v38 = vsel %vm378_vm12, %v368_v30, 2102212464  ;;  %v383_v40 = vsel %vm375_vm9, %v362_v28, %v365_v29  ;;  %v387_v41 = vsel %vm375_vm9, %v365_v29, %v368_v30 }
  0x97   :  { %v381_v42 = vsel %vm377_vm11, %v365_v29, %v380_v38  ;;  %v384_v44 = vsel %vm378_vm12, %v371_v32, 920167782  ;;  %v388_v45 = vsel %vm378_vm12, %v374_v35, 1326507024  ;;  %v155_v50 = vshll.u32 %v1107_v10, %v149_v7 }
  0x98   :  { %v385_v47 = vsel %vm377_vm11, %v368_v30, %v384_v44  ;;  %v389_v48 = vsel %vm377_vm11, %v371_v32, %v388_v45  ;;  %v382_v51 = vsel %vm376_vm10, %v379_v37, %v381_v42  ;;  %v156_v54 = vshrl.u32 %v1108_v12, %v150_v31 }
  0x99   :  { %v386_v52 = vsel %vm376_vm10, %v383_v40, %v385_v47  ;;  %v390_v53 = vsel %vm376_vm10, %v387_v41, %v389_v48  ;;  %v154_v59 = vor.u32 %v153_v49, %v152_v46  ;;  %v158_v62 = vshll.u32 %v1108_v12, %v149_v7 }
  0x9a   :  { %v1244_v55 = vmul.u32.u64.low %v1213_v0, %v390_v53  ;;  %v1245_v56 = vmul.u32.u64.high %v1213_v0, %v390_v53, %v1244_v55  ;;  %v1248_v57 = vmul.u32.u64.low %v1213_v0, %v386_v52  ;;  %v1249_v58 = vmul.u32.u64.high %v1213_v0, %v386_v52, %v1248_v57 }
  0x9b   :  { %v157_v61 = vor.u32 %v156_v54, %v155_v50  ;;  %v159_v4 = vshrl.u32 %v1109_v15, %v150_v31  ;;  %v151_v60 = vshrl.u32 %v1106_v5, %v150_v31  ;;  %v161_v6 = vshll.u32 %v1109_v15, %v149_v7 }
  0x9c   :  { %v162_v11 = vshrl.u32 %v1110_v17, %v150_v31  ;;  %v165_v13 = vshrl.u32 %v1111_v26, %v150_v31  ;;  %v398_v16 = vmul.u32 %v1213_v0, %v382_v51  ;;  %v164_v21 = vshll.u32 %v1110_v17, %v149_v7 }
  0x9d   :  { %v160_v20 = vor.u32 %v159_v4, %v158_v62  ;;  %vm167_vm13 = vcmp.lt.s32.totalorder %v1215_v1, 1  ;;  %vm400_vm14 = vc.u32 %v1245_v56, %v1248_v57  ;;  %v401_v22 = vadd.s32 1, %v1249_v58 }
  0x9e   :  { %v163_v23 = vor.u32 %v162_v11, %v161_v6  ;;  %vm168_vm15 = vcmp.lt.s32.totalorder %v1215_v1, 2  ;;  %v166_v24 = vor.u32 %v165_v13, %v164_v21  ;;  %vm169_vm0 = vcmp.lt.s32.totalorder %v1215_v1, 3 }
  0x9f   :  { %vm170_vm1 = vcmp.lt.s32.totalorder %v1215_v1, 4  ;;  %v175_v25 = vsel %vm167_vm13, %v154_v59, %v157_v61  ;;  %v402_v0 = vsel %vm400_vm14, %v401_v22, %v1249_v58  ;;  %v179_v28 = vsel %vm167_vm13, %v157_v61, %v160_v20 }
  0xa0   :  { %v172_v27 = vsel %vm170_vm1, %v160_v20, 2102212464  ;;  %v176_v7 = vsel %vm170_vm1, %v163_v23, 920167782  ;;  %v403_v29 = vadd.s32 %v402_v0, %v398_v16  ;;  %v171_v30 = vsel %vm167_vm13, %v151_v60, %v154_v59 }
  0xa1   :  { %v177_v31 = vsel %vm169_vm0, %v160_v20, %v176_v7  ;;  %v180_v32 = vsel %vm170_vm1, %v166_v24, 1326507024  ;;  %v173_v35 = vsel %vm169_vm0, %v157_v61, %v172_v27  ;;  %vm458_vm2 = vcmp.gt.s32.totalorder %v1221_v8, 0 }
  0xa2   :  { %v178_v37 = vsel %vm168_vm15, %v175_v25, %v177_v31  ;;  %v181_v38 = vsel %vm169_vm0, %v163_v23, %v180_v32  ;;  %v404_v40 = vadd.s32 536870912, %v403_v29  ;;  %v459_v47 = vsel %vm458_vm2, %v1221_v8, 0 }
  0xa3   :  { %v182_v41 = vsel %vm168_vm15, %v179_v28, %v181_v38  ;;  %v1274_v42 = vmul.u32.u64.low %v1217_v2, %v178_v37  ;;  %v1275_v44 = vmul.u32.u64.high %v1217_v2, %v178_v37, %v1274_v42  ;;  %v174_v49 = vsel %vm168_vm15, %v171_v30, %v173_v35 }
  0xa4   :  { %v1279_v45 = vmul.u32.u64.low %v1217_v2, %v182_v41  ;;  %v1280_v46 = vmul.u32.u64.high %v1217_v2, %v182_v41, %v1279_v45  ;;  %v1283_v48 = vshrl.u32 %v404_v40, 30  ;;  %v461_v50 = vand.u32 31, %v459_v47 }
  0xa5   :  { %v454_v51 = vand.u32 8388607, %v447_v3  ;;  %v193_v53 = vadd.s32 1, %v1275_v44  ;;  %v242_v55 = vand.u32 2139095040, %v1211_v63  ;;  %v190_v58 = vmul.u32 %v1217_v2, %v174_v49 }
  0xa6   :  { %v406_v52 = vshll.u32 %v1283_v48, 30  ;;  %v462_v54 = vsub.s32 32, %v461_v50  ;;  %vm192_vm3 = vc.u32 %v1280_v46, %v1274_v42  ;;  %v68_v4 = vrot.slane %v1167_v9, 6 }
  0xa7   :  { %v194_v1 = vsel %vm192_vm3, %v193_v53, %v1275_v44  ;;  %v455_v6 = vor.u32 8388608, %v454_v51  ;;  %v1302_v11 = vshrl.u32 %v459_v47, 5  ;;  %v243_v2 = vshrl.u32 %v242_v55, 23 }
  0xa8   :  { %v1295_v8 = vsub.s32 %v403_v29, %v406_v52  ;;  %v195_v59 = vadd.s32 %v194_v1, %v190_v58  ;;  %v465_v61 = vshrl.u32 %v1107_v10, %v462_v54  ;;  %v468_v62 = vshrl.u32 %v1108_v12, %v462_v54 }
  0xa9   :  { %v464_v16 = vshll.u32 %v1106_v5, %v461_v50  ;;  %v467_v20 = vshll.u32 %v1107_v10, %v461_v50  ;;  %v471_v21 = vshrl.u32 %v1109_v15, %v462_v54  ;;  %v470_v23 = vshll.u32 %v1108_v12, %v461_v50 }
  0xaa   :  { %v409_v60 = vsub.s32 0, %v1295_v8  ;;  %v196_v13 = vadd.s32 536870912, %v195_v59  ;;  %v473_v24 = vshll.u32 %v1109_v15, %v461_v50  ;;  %v474_v25 = vshrl.u32 %v1110_v17, %v462_v54 }
  0xab   :  { %v466_v27 = vor.u32 %v465_v61, %v464_v16  ;;  %v469_v7 = vor.u32 %v468_v62, %v467_v20  ;;  %v239_v28 = vand.u32 2147483647, %v1211_v63  ;;  %v472_v30 = vor.u32 %v471_v21, %v470_v23 }
  0xac   :  { %v1006_v22 = vmin.u32 %v409_v60, %v1295_v8  ;;  %v1311_v0 = vshrl.u32 %v196_v13, 30  ;;  %v475_v31 = vor.u32 %v474_v25, %v473_v24  ;;  %v477_v32 = vshrl.u32 %v1111_v26, %v462_v54 }
  0xad   :  { %v399_v35 = vadd.s32 %v1248_v57, %v1245_v56  ;;  %v1318_v38 = vshll.u32 %v455_v6, 8  ;;  %v1001_v40 = vadd.s32 4294967169, %v243_v2  ;;  %v463_v44 = vshrl.u32 %v1106_v5, %v462_v54 }
  0xae   :  { %v411_v29 = vclz %v1006_v22  ;;  %v198_v37 = vshll.u32 %v1311_v0, 30  ;;  %v476_v45 = vshll.u32 %v1110_v17, %v461_v50  ;;  %vm482_vm4 = vcmp.lt.s32.totalorder %v1302_v11, 4 }
  0xaf   :  { %vm479_vm7 = vcmp.lt.s32.totalorder %v1302_v11, 1  ;;  %vm481_vm8 = vcmp.lt.s32.totalorder %v1302_v11, 3  ;;  %v488_v56 = vsel %vm482_vm4, %v475_v31, 920167782  ;;  %v429_v52 = vsub.s32 4, %v1283_v48 }
  0xb0   :  { %v1007_v41 = vadd.s32 4294967294, %v411_v29  ;;  %v1323_v47 = vsub.s32 %v195_v59, %v198_v37  ;;  %v478_v57 = vor.u32 %v477_v32, %v476_v45  ;;  %v487_v49 = vsel %vm479_vm7, %v466_v27, %v469_v7 }
  0xb1   :  { %v489_v51 = vsel %vm481_vm8, %v472_v30, %v488_v56  ;;  %vm480_vm10 = vcmp.lt.s32.totalorder %v1302_v11, 2  ;;  %vm345_vm11 = vcmp.lt.s32.totalorder %v1193_v33, 0  ;;  %vm137_vm12 = vcmp.lt.s32.totalorder %v1195_v34, 0 }
  0xb2   :  { %vm1008_vm9 = vcmp.lt.s32.totalorder %v1007_v41, 0  ;;  %v201_v53 = vsub.s32 0, %v1323_v47  ;;  %v221_v58 = vsub.s32 4, %v1311_v0  ;;  %v483_v1 = vsel %vm479_vm7, %v463_v44, %v466_v27 }
  0xb3   :  { %v414_v50 = vsel %vm1008_vm9, 0, %v1007_v41  ;;  %v484_v61 = vsel %vm482_vm4, %v472_v30, 2102212464  ;;  %v490_v62 = vsel %vm480_vm10, %v487_v49, %v489_v51  ;;  %v491_v60 = vsel %vm479_vm7, %v469_v7, %v472_v30 }
  0xb4   :  { %v415_v54 = vsub.s32 32, %v414_v50  ;;  %v419_v55 = vsub.s32 4294967266, %v414_v50  ;;  %v998_v59 = vmin.u32 %v201_v53, %v1323_v47  ;;  %v416_v6 = vshll.u32 %v1295_v8, %v414_v50 }
  0xb5   :  { %v492_v16 = vsel %vm482_vm4, %v478_v57, 1326507024  ;;  %v1354_v22 = vmul.u32.u64.low %v1318_v38, %v490_v62  ;;  %v1355_v23 = vmul.u32.u64.high %v1318_v38, %v490_v62, %v1354_v22  ;;  %v485_v27 = vsel %vm481_vm8, %v469_v7, %v484_v61 }
  0xb6   :  { %v417_v2 = vshrl.u32 %v399_v35, %v415_v54  ;;  %v420_v13 = vadd.s32 127, %v419_v55  ;;  %v203_v20 = vclz %v998_v59  ;;  %v493_v21 = vsel %vm481_vm8, %v475_v31, %v492_v16 }
  0xb7   :  { %v494_v8 = vsel %vm480_vm10, %v491_v60, %v493_v21  ;;  %v249_v35 = vadd.s32 1, %v1001_v40  ;;  %vm1368_vm13 = vcmp.le.f32.partialorder %v135_v39, 0.7853982  ;;  %v191_v41 = vadd.s32 %v1274_v42, %v1280_v46 }
  0xb8   :  { %v418_v24 = vor.u32 %v417_v2, %v416_v6  ;;  %v421_v25 = vshll.u32 %v420_v13, 23  ;;  %v999_v29 = vadd.s32 4294967294, %v203_v20  ;;  %v246_v7 = vand.u32 8388607, %v239_v28 }
  0xb9   :  { %v1363_v30 = vmul.u32.u64.low %v1318_v38, %v494_v8  ;;  %v1364_v32 = vmul.u32.u64.high %v1318_v38, %v494_v8, %v1363_v30  ;;  %v486_v44 = vsel %vm480_vm10, %v483_v1, %v485_v27  ;;  %v505_v45 = vadd.s32 1, %v1355_v23 }
  0xba   :  { %v422_v31 = vor.u32 4788187, %v421_v25  ;;  %vm1000_vm14 = vcmp.lt.s32.totalorder %v999_v29, 0  ;;  %vm250_vm15 = vcmp.gt.s32.totalorder %v249_v35, 0  ;;  %v425_v56 = vcvt.s32.f32 %v418_v24 }
  0xbb   :  { %v206_v57 = vsel %vm1000_vm14, 0, %v999_v29  ;;  %v251_v39 = vsel %vm250_vm15, %v249_v35, 0  ;;  %v430_v49 = vsel %vm345_vm11, %v429_v52, %v1283_v48  ;;  %v222_v46 = vsel %vm137_vm12, %v221_v58, %v1311_v0  ;;  %v106_v48 = vpop.permute.xlu0 %105 }
  0xbc   :  { %v423_v40 = vand.u32 2147483647, %v422_v31  ;;  %v207_v51 = vsub.s32 32, %v206_v57  ;;  %v211_v42 = vsub.s32 4294967266, %v206_v57  ;;  %v502_v11 = vmul.u32 %v1318_v38, %v486_v44 }
  0xbd   :  { %vm504_vm0 = vc.u32 %v1364_v32, %v1354_v22  ;;  %v253_v53 = vand.u32 31, %v251_v39  ;;  %v208_v54 = vshll.u32 %v1323_v47, %v206_v57  ;;  %v1392_v52 = vsel %vm1368_vm13, 0, %v222_v46 }
  0xbe   :  { %v426_v50 = vmul.f32 %v425_v56, %v423_v40  ;;  %v209_v55 = vshrl.u32 %v191_v41, %v207_v51  ;;  %v212_v1 = vadd.s32 127, %v211_v42  ;;  %v506_v59 = vsel %vm504_vm0, %v505_v45, %v1355_v23 }
  0xbf   :  { %v507_v61 = vadd.s32 %v506_v59, %v502_v11  ;;  %v254_v0 = vsub.s32 32, %v253_v53  ;;  %v70_v58 = vrot.slane %v1167_v9, 3  ;;  %vm1397_vm1 = vcmp.le.f32.partialorder %v343_v36, 0.7853982 }
  0xc0   :  { %v210_v47 = vor.u32 %v209_v55, %v208_v54  ;;  %v213_v62 = vshll.u32 %v212_v1, 23  ;;  %v1406_v60 = vsel %vm53_vm5, %v66_v14, %v68_v4  ;;  %v427_v6 = vxor.u32 2147483648, %v426_v50 }
  0xc1   :  { %v1410_v2 = vsel %vm1397_vm1, 0, %v430_v49  ;;  %v508_v13 = vadd.s32 536870912, %v507_v61  ;;  %v123_v36 = vmul.f32 %v106_v48, %v1184_v19  ;;  %v1414_v20 = vadd.s32 3, %v1392_v52 }
  0xc2   :  { %v214_v16 = vor.u32 4788187, %v213_v62  ;;  %v247_v21 = vor.u32 8388608, %v246_v7  ;;  %v257_v23 = vshrl.u32 %v1107_v10, %v254_v0  ;;  %v252_v25 = vshrl.u32 %v251_v39, 5 }
  0xc3   :  { %v1417_v24 = vshrl.u32 %v508_v13, 30  ;;  %v260_v14 = vshrl.u32 %v1108_v12, %v254_v0  ;;  %v263_v4 = vshrl.u32 %v1109_v15, %v254_v0  ;;  %v217_v8 = vcvt.s32.f32 %v210_v47 }
  0xc4   :  { %v215_v27 = vand.u32 2147483647, %v214_v16  ;;  %v256_v29 = vshll.u32 %v1106_v5, %v253_v53  ;;  %v259_v19 = vshll.u32 %v1107_v10, %v253_v53  ;;  %v428_v30 = vsel %vm345_vm11, %v427_v6, %v426_v50 }
  0xc5   :  { %v510_v35 = vshll.u32 %v1417_v24, 30  ;;  %v262_v31 = vshll.u32 %v1108_v12, %v253_v53  ;;  %v266_v41 = vshrl.u32 %v1110_v17, %v254_v0  ;;  %v265_v45 = vshll.u32 %v1109_v15, %v253_v53 }
  0xc6   :  { %v218_v7 = vmul.f32 %v217_v8, %v215_v27  ;;  %v258_v44 = vor.u32 %v257_v23, %v256_v29  ;;  %v269_v40 = vshrl.u32 %v1111_v26, %v254_v0  ;;  %v261_v57 = vor.u32 %v260_v14, %v259_v19 }
  0xc7   :  { %v1430_v56 = vsub.s32 %v507_v61, %v510_v35  ;;  %v264_v39 = vor.u32 %v263_v4, %v262_v31  ;;  %v268_v10 = vshll.u32 %v1110_v17, %v253_v53  ;;  %v267_v51 = vor.u32 %v266_v41, %v265_v45 }
  0xc8   :  { %v219_v49 = vxor.u32 2147483648, %v218_v7  ;;  %v287_v42 = vshll.u32 %v247_v21, 8  ;;  %v127_v46 = vmul.f32 1.442695, %v123_v36  ;;  %v431_v12 = vsel %vm1397_vm1, %v1193_v33, %v428_v30 }
  0xc9   :  { %v513_v50 = vsub.s32 0, %v1430_v56  ;;  %v255_v15 = vshrl.u32 %v1106_v5, %v254_v0  ;;  %v270_v11 = vor.u32 %v269_v40, %v268_v10  ;;  %vm271_vm5 = vcmp.lt.s32.totalorder %v252_v25, 1 }
  0xca   :  { %v220_v26 = vsel %vm137_vm12, %v219_v49, %v218_v7  ;;  %vm272_vm2 = vcmp.lt.s32.totalorder %v252_v25, 2  ;;  %vm274_vm3 = vcmp.lt.s32.totalorder %v252_v25, 4  ;;  %v279_v55 = vsel %vm271_vm5, %v258_v44, %v261_v57 }
  0xcb   :  { %v223_v17 = vsel %vm1368_vm13, %v1195_v34, %v220_v26  ;;  %v1010_v53 = vmin.u32 %v513_v50, %v1430_v56  ;;  %v276_v54 = vsel %vm274_vm3, %v264_v39, 2102212464  ;;  %vm273_vm4 = vcmp.lt.s32.totalorder %v252_v25, 3 }
  0xcc   :  { %1057 = vcosq.f32 %v223_v17  ;;  %v280_v1 = vsel %vm274_vm3, %v267_v51, 920167782  ;;  %v283_v59 = vsel %vm271_vm5, %v261_v57, %v264_v39  ;;  %v284_v61 = vsel %vm274_vm3, %v270_v11, 1326507024 }
  0xcd   :  { %1059 = vsinq.f32 %v223_v17  ;;  %v515_v5 = vclz %v1010_v53  ;;  %v281_v48 = vsel %vm273_vm4, %v264_v39, %v280_v1  ;;  %v275_v0 = vsel %vm271_vm5, %v255_v15, %v258_v44  ;;  %v1471_v44 = vpop.permute.xlu1 %110 }
  0xce   :  { %v277_v38 = vsel %vm273_vm4, %v261_v57, %v276_v54  ;;  %v282_v47 = vsel %vm272_vm2, %v279_v55, %v281_v48  ;;  %v285_v62 = vsel %vm273_vm4, %v267_v51, %v284_v61  ;;  %v436_v16 = vadd.s32 3, %v1410_v2 }
  0xcf   :  { %v1011_v6 = vadd.s32 4294967294, %v515_v5  ;;  %v286_v37 = vsel %vm272_vm2, %v283_v59, %v285_v62  ;;  %v1446_v13 = vmul.u32.u64.low %v287_v42, %v282_v47  ;;  %v1447_v36 = vmul.u32.u64.high %v287_v42, %v282_v47, %v1446_v13 }
  0xd0   :  { %v1451_v21 = vmul.u32.u64.low %v287_v42, %v286_v37  ;;  %v1452_v23 = vmul.u32.u64.high %v287_v42, %v286_v37, %v1451_v21  ;;  %1061 = vpow2.f32 %v127_v46  ;;  %v278_v14 = vsel %vm272_vm2, %v275_v0, %v277_v38 }
  0xd1   :  { %1063 = vsinq.f32 %v431_v12  ;;  %vm1012_vm7 = vcmp.lt.s32.totalorder %v1011_v6, 0  ;;  %v78_v4 = vsel %vm55_vm6, %v1406_v60, %v70_v58  ;;  %v229_v27 = vand.u32 3, %v1414_v20  ;;  %v121_v38 = vpop.permute.xlu1 %120 }
  0xd2   :  { %1065 = vcosq.f32 %v431_v12  ;;  %v654_v8 = vand.u32 3, %v1392_v52  ;;  %v518_v29 = vsel %vm1012_vm7, 0, %v1011_v6  ;;  %v503_v19 = vadd.s32 %v1354_v22, %v1364_v32  ;;  %v116_v22 = vpop.permute.xlu0 %115 }
  0xd3   :  { %v519_v30 = vsub.s32 32, %v518_v29  ;;  %v523_v35 = vsub.s32 4294967266, %v518_v29  ;;  %v297_v31 = vadd.s32 1, %v1447_v36  ;;  %v1464_v25 = vand.u32 3, %v436_v16 }
  0xd4   :  { %vm227_vm8 = vweird.f32 %v1195_v34  ;;  %v294_v41 = vmul.u32 %v287_v42, %v278_v14  ;;  %vm296_vm6 = vc.u32 %v1452_v23, %v1446_v13  ;;  %vm555_vm9 = vcmask 818176  }
  0xd5   :  { %v520_v58 = vshll.u32 %v1430_v56, %v518_v29  ;;  %v521_v52 = vshrl.u32 %v503_v19, %v519_v30  ;;  %v524_v60 = vadd.s32 127, %v523_v35  ;;  %v298_v20 = vsel %vm296_vm6, %v297_v31, %v1447_v36 }
  0xd6   :  { %v1058_v32 = vpop.eup %1057  ;;  %v299_v7 = vadd.s32 %v298_v20, %v294_v41  ;;  %vm230_vm10 = vcmp.lt.s32.totalorder %v229_v27, 2  ;;  %vm231_vm11 = vcmp.eq.s32.totalorder %v229_v27, 0  ;;  %vm234_vm12 = vcmp.eq.s32.totalorder %v229_v27, 2 }
  0xd7   :  { %v1060_v45 = vpop.eup %1059  ;;  %v522_v40 = vor.u32 %v521_v52, %v520_v58  ;;  %v525_v57 = vshll.u32 %v524_v60, 23  ;;  %v235_v39 = vxor.u32 2147483648, %v1058_v32  ;;  %vm655_vm13 = vcmp.lt.s32.totalorder %v654_v8, 2 }
  0xd8   :  { %v300_v10 = vadd.s32 536870912, %v299_v7  ;;  %v232_v49 = vxor.u32 2147483648, %v1060_v45  ;;  %vm659_vm14 = vcmp.eq.s32.totalorder %v654_v8, 2  ;;  %v125_v56 = vmul.f32 %v116_v22, %v78_v4 }
  0xd9   :  { %v526_v51 = vor.u32 4788187, %v525_v57  ;;  %v236_v42 = vsel %vm234_vm12, %v235_v39, %v1060_v45  ;;  %vm656_vm15 = vcmp.eq.s32.totalorder %v654_v8, 0  ;;  %v661_v46 = vsel %vm659_vm14, %v235_v39, %v1060_v45 }
  0xda   :  { %v1062_v12 = vpop.eup %1061  ;;  %v1473_v50 = vshrl.u32 %v300_v10, 30  ;;  %v233_v15 = vsel %vm231_vm11, %v1058_v32, %v232_v49  ;;  %v658_v11 = vsel %vm656_vm15, %v1058_v32, %v232_v49  ;;  %v131_v26 = vmul.f32 1.442695, %v125_v56 }
  0xdb   :  { %v1064_v17 = vpop.eup %1063  ;;  %v527_v53 = vand.u32 2147483647, %v526_v51  ;;  %v529_v54 = vcvt.s32.f32 %v522_v40  ;;  %v237_v55 = vsel %vm230_vm10, %v233_v15, %v236_v42  ;;  %v662_v1 = vsel %vm655_vm13, %v658_v11, %v661_v46 }
  0xdc   :  { %v1066_v59 = vpop.eup %1065  ;;  %v533_v5 = vsub.s32 4, %v1417_v24  ;;  %v302_v48 = vshll.u32 %v1473_v50, 30  ;;  %v238_v61 = vsel %vm227_vm8, nan, %v237_v55  ;;  %v663_v0 = vsel %vm227_vm8, nan, %v662_v1 }
  0xdd   :  { %v530_v47 = vmul.f32 %v529_v54, %v527_v53  ;;  %v551_v62 = vmul.f32 %v1062_v12, %v238_v61  ;;  %v973_v6 = vmul.f32 %v1062_v12, %v663_v0  ;;  %1067 = vpow2.f32 %v131_v26 }
  0xde   :  { %v860_v37 = vand.u32 3, %v1410_v2  ;;  %vm449_vm0 = vcmp.lt.s32.totalorder %v1202_v43, 0  ;;  %v303_v36 = vsub.s32 %v299_v7, %v302_v48  ;;  %v440_v16 = vxor.u32 2147483648, %v1064_v17 }
  0xdf   :  { %v531_v21 = vxor.u32 2147483648, %v530_v47  ;;  %556 = vst.msk [vmem:[#allocation2] sm:$0xff] %vm555_vm9, %v551_v62  ;;  %977 = vst.msk [vmem:[#allocation2 + $0x1b] sm:$0xff] %vm555_vm9, %v973_v6  ;;  %v126_v14 = vmul.f32 %v121_v38, %v1167_v9  ;;  %vm439_vm1 = vcmp.eq.s32.totalorder %v1464_v25, 0  ;;  %v443_v34 = vxor.u32 2147483648, %v1066_v59 }
  0xe0   :  { %v534_v4 = vsel %vm449_vm0, %v533_v5, %v1417_v24  ;;  %v305_v27 = vsub.s32 0, %v303_v36  ;;  %v441_v8 = vsel %vm439_vm1, %v1066_v59, %v440_v16  ;;  %vm442_vm5 = vcmp.eq.s32.totalorder %v1464_v25, 2 }
  0xe1   :  { %vm448_vm2 = vcmp.le.f32.partialorder %v447_v3, 0.7853982  ;;  %v532_v2 = vsel %vm449_vm0, %v531_v21, %v530_v47  ;;  %v444_v29 = vsel %vm442_vm5, %v443_v34, %v1064_v17  ;;  %vm435_vm3 = vweird.f32 %v1193_v33 }
  0xe2   :  { %v535_v19 = vsel %vm448_vm2, %v1202_v43, %v532_v2  ;;  %v1002_v30 = vmin.u32 %v305_v27, %v303_v36  ;;  %vm438_vm4 = vcmp.lt.s32.totalorder %v1464_v25, 2  ;;  %v536_v9 = vsel %vm448_vm2, 0, %v534_v4 }
  0xe3   :  { %1069 = vcosq.f32 %v535_v19  ;;  %v133_v35 = vmul.f32 1.442695, %v126_v14  ;;  %v445_v24 = vsel %vm438_vm4, %v441_v8, %v444_v29  ;;  %vm862_vm7 = vcmp.eq.s32.totalorder %v860_v37, 0 }
  0xe4   :  { %1071 = vsinq.f32 %v535_v19  ;;  %v307_v31 = vclz %v1002_v30  ;;  %vm865_vm8 = vcmp.eq.s32.totalorder %v860_v37, 2  ;;  %v446_v3 = vsel %vm435_vm3, nan, %v445_v24 }
  0xe5   :  { %vm861_vm6 = vcmp.lt.s32.totalorder %v860_v37, 2  ;;  %v864_v41 = vsel %vm862_vm7, %v1066_v59, %v440_v16  ;;  %v867_v58 = vsel %vm865_vm8, %v443_v34, %v1064_v17  ;;  %v540_v22 = vadd.s32 3, %v536_v9 }
  0xe6   :  { %v1003_v52 = vadd.s32 4294967294, %v307_v31  ;;  %v868_v60 = vsel %vm861_vm6, %v864_v41, %v867_v58  ;;  %1073 = vpow2.f32 %v133_v35  ;;  %v295_v40 = vadd.s32 %v1446_v13, %v1452_v23 }
  0xe7   :  { %v1068_v20 = vpop.eup %1067  ;;  %v869_v25 = vsel %vm435_vm3, nan, %v868_v60  ;;  %v541_v10 = vand.u32 3, %v540_v22  ;;  %v963_v49 = vand.u32 3, %v536_v9  ;;  %vm539_vm11 = vweird.f32 %v1202_v43 }
  0xe8   :  { %vm1004_vm10 = vcmp.lt.s32.totalorder %v1003_v52, 0  ;;  %v553_v32 = vmul.f32 %v1068_v20, %v446_v3  ;;  %v975_v7 = vmul.f32 %v1068_v20, %v869_v25  ;;  %vm559_vm5 = vcmask 813056  }
  0xe9   :  { %v310_v45 = vsel %vm1004_vm10, 0, %v1003_v52  ;;  %vm543_vm12 = vcmp.eq.s32.totalorder %v541_v10, 0  ;;  %vm546_vm13 = vcmp.eq.s32.totalorder %v541_v10, 2  ;;  %vm968_vm14 = vcmp.eq.s32.totalorder %v963_v49, 2 }
  0xea   :  { %v311_v57 = vsub.s32 32, %v310_v45  ;;  %v315_v39 = vsub.s32 4294967266, %v310_v45  ;;  %558 = vst.msk [vmem:[#allocation2 + $0x10] sm:$0xff] %vm555_vm9, %v553_v32  ;;  %979 = vst.msk [vmem:[#allocation2 + $0x2b] sm:$0xff] %vm555_vm9, %v975_v7  ;;  %v312_v56 = vshll.u32 %v303_v36, %v310_v45  ;;  %vm965_vm15 = vcmp.eq.s32.totalorder %v963_v49, 0 }
  0xeb   :  { %vm542_vm0 = vcmp.lt.s32.totalorder %v541_v10, 2  ;;  %vm964_vm1 = vcmp.lt.s32.totalorder %v963_v49, 2  ;;  %v325_v47 = vsub.s32 4, %v1473_v50  ;;  %vm241_vm2 = vcmp.lt.s32.totalorder %v1211_v63, 0 }
  0xec   :  { %v313_v51 = vshrl.u32 %v295_v40, %v311_v57  ;;  %v316_v33 = vadd.s32 127, %v315_v39  ;;  %vm240_vm3 = vcmp.le.f32.partialorder %v239_v28, 0.7853982  ;;  %v124_v43 = vmul.f32 %v1471_v44, %v1181_v18 }
  0xed   :  { %v1070_v42 = vpop.eup %1069  ;;  %v326_v16 = vsel %vm241_vm2, %v325_v47, %v1473_v50 }
  0xee   :  { %v1072_v46 = vpop.eup %1071  ;;  %v314_v12 = vor.u32 %v313_v51, %v312_v56  ;;  %v317_v15 = vshll.u32 %v316_v33, 23  ;;  %v547_v11 = vxor.u32 2147483648, %v1070_v42  ;;  %v328_v14 = vsel %vm240_vm3, 0, %v326_v16 }
  0xef   :  { %v544_v13 = vxor.u32 2147483648, %v1072_v46  ;;  %v129_v34 = vmul.f32 1.442695, %v124_v43  ;;  %v332_v4 = vadd.s32 3, %v328_v14  ;;  %v757_v8 = vand.u32 3, %v328_v14 }
  0xf0   :  { %v318_v23 = vor.u32 4788187, %v317_v15  ;;  %v548_v26 = vsel %vm546_vm13, %v547_v11, %v1072_v46  ;;  %v970_v17 = vsel %vm968_vm14, %v547_v11, %v1072_v46  ;;  %v321_v1 = vcvt.s32.f32 %v314_v12  ;;  %v1074_v48 = vpop.eup %1073 }
  0xf1   :  { %v545_v53 = vsel %vm543_vm12, %v1070_v42, %v544_v13  ;;  %v967_v54 = vsel %vm965_vm15, %v1070_v42, %v544_v13  ;;  %v333_v27 = vand.u32 3, %v332_v4  ;;  %vm762_vm7 = vcmp.eq.s32.totalorder %v757_v8, 2 }
  0xf2   :  { %v319_v55 = vand.u32 2147483647, %v318_v23  ;;  %v549_v59 = vsel %vm542_vm0, %v545_v53, %v548_v26  ;;  %v971_v5 = vsel %vm964_vm1, %v967_v54, %v970_v17  ;;  %vm759_vm6 = vcmp.eq.s32.totalorder %v757_v8, 0 }
  0xf3   :  { %v550_v61 = vsel %vm539_vm11, nan, %v549_v59  ;;  %v972_v0 = vsel %vm539_vm11, nan, %v971_v5  ;;  %vm338_vm4 = vcmp.eq.s32.totalorder %v333_v27, 2  ;;  %vm335_vm8 = vcmp.eq.s32.totalorder %v333_v27, 0 }
  0xf4   :  { %v322_v38 = vmul.f32 %v321_v1, %v319_v55  ;;  %v554_v62 = vmul.f32 %v1074_v48, %v550_v61  ;;  %v976_v6 = vmul.f32 %v1074_v48, %v972_v0  ;;  %vm334_vm10 = vcmp.lt.s32.totalorder %v333_v27, 2 }
  0xf5   :  { %vm758_vm11 = vcmp.lt.s32.totalorder %v757_v8, 2  ;;  %vm331_vm12 = vweird.f32 %v1211_v63 }
  0xf6   :  { %v323_v37 = vxor.u32 2147483648, %v322_v38  ;;  %560 = vst.msk [vmem:[#allocation2 + $0x18] sm:$0x7] %vm559_vm5, %v554_v62  ;;  %980 = vst.msk [vmem:[#allocation2 + $0x33] sm:$0x7] %vm559_vm5, %v976_v6 }
  0xf8   :  { %v324_v36 = vsel %vm241_vm2, %v323_v37, %v322_v38 }
  0xf9   :  { %v327_v21 = vsel %vm240_vm3, %v1211_v63, %v324_v36 }
  0xfa   :  { %1075 = vcosq.f32 %v327_v21 }
  0xfb   :  { %1077 = vsinq.f32 %v327_v21 }
  0xfc   :  { %1079 = vpow2.f32 %v129_v34 }
 0x104   :  { %v1076_v2 = vpop.eup %1075 }
 0x105   :  { %v1078_v29 = vpop.eup %1077  ;;  %v339_v19 = vxor.u32 2147483648, %v1076_v2 }
 0x106   :  { %v336_v28 = vxor.u32 2147483648, %v1078_v29  ;;  %v1080_v24 = vpop.eup %1079 }
 0x107   :  { %v340_v50 = vsel %vm338_vm4, %v339_v19, %v1078_v29  ;;  %v764_v18 = vsel %vm762_vm7, %v339_v19, %v1078_v29 }
 0x108   :  { %v337_v44 = vsel %vm335_vm8, %v1076_v2, %v336_v28  ;;  %v761_v30 = vsel %vm759_vm6, %v1076_v2, %v336_v28 }
 0x109   :  { %v341_v9 = vsel %vm334_vm10, %v337_v44, %v340_v50  ;;  %v765_v35 = vsel %vm758_vm11, %v761_v30, %v764_v18 }
 0x10a   :  { %v342_v31 = vsel %vm331_vm12, nan, %v341_v9  ;;  %v766_v3 = vsel %vm331_vm12, nan, %v765_v35 }
 0x10b   :  { %v552_v41 = vmul.f32 %v1080_v24, %v342_v31  ;;  %v974_v58 = vmul.f32 %v1080_v24, %v766_v3 }
 0x10d   :  { %557 = vst.msk [vmem:[#allocation2 + $0x8] sm:$0xff] %vm555_vm9, %v552_v41  ;;  %978 = vst.msk [vmem:[#allocation2 + $0x23] sm:$0xff] %vm555_vm9, %v974_v58 }
 0x10e   :  { %1092 = shalt.err (!%p1089_p4)
}
 0x10f   :  { %s1093_s10 = scalar_lea.hbm %s1537_s4, 896 }
 0x110   :  { %p1094_p5 = scmp.ne.s32.totalorder %s1537_s4, %s1093_s10  ;;  %p1097_p6 = scmp.lt.u32.totalorder %s1093_s10, %s1537_s4 }
 0x112   :  { %p1099_p7 = pnand %p1097_p6, %p1094_p5 }
 0x114   :  { %1102 = shalt.err (!%p1099_p7)
}
 0x115   :  { %s1113_s15 = smov 128   ;;  %s1114_s16 = smov 8  }
 0x116   :  { %992 = dma.vmem_to_hbm [thread:$0]  %s987_s6, 896, %s1537_s4, [#allocation3], %s1113_s15, %s1113_s15, %s1114_s16  }
 0x117   :  { %1103 = dma.done.wait [#allocation3], 896  }
 0x118   :  { %1104 = vsyncadd [#allocation3], 4294966400 }
 0x119   :  { %996 = vsyncpa [#allocation3], 1 }

</bundles_post_ra>
